<compile_context>
chip_gen: v7x
topology: tpu7x:2x2x1
jax: 0.10.0
libtpu: 0.0.40
codegen_flags: <defaults>
</compile_context>

<pallas_src>
import functools
import math

import jax
import jax.numpy as jnp
import numpy as np
from jax import lax
from jax.experimental import pallas as pl
from jax.experimental.pallas import tpu as pltpu

F32 = jnp.float32
BF16 = jnp.bfloat16


def _round_up(x, m):
    return ((x + m - 1) // m) * m


def _conv_out(n, k, s):
    return (n + 2 * (k // 2) - k) // s + 1


# ----------------------------------------------------------------------------
# Pallas kernels
# ----------------------------------------------------------------------------
def _matmul_kernel(a_ref, b_ref, bias_ref, o_ref, acc_ref, *, act):
    @pl.when(pl.program_id(2) == 0)
    def _():
        acc_ref[...] = jnp.zeros_like(acc_ref)

    acc_ref[...] += jnp.dot(a_ref[...], b_ref[...],
                            preferred_element_type=jnp.float32)

    @pl.when(pl.program_id(2) == pl.num_programs(2) - 1)
    def _():
        acc = acc_ref[...] + bias_ref[...]
        if act == "tanh":
            acc = jnp.tanh(acc)
        elif act == "softplus":
            acc = jnp.maximum(acc, 0.0) + jnp.log1p(jnp.exp(-jnp.abs(acc)))
        o_ref[...] = acc


_MM_KERNELS = {a: functools.partial(_matmul_kernel, act=a)
               for a in ("none", "tanh", "softplus")}


def pallas_matmul(a, b, bias=None, act="none"):
    """act(a @ b + bias); bf16 MXU operands, f32 accumulation/activation."""
    M, K = a.shape
    K2, N = b.shape
    assert K == K2
    if bias is None:
        bias = jnp.zeros((N,), F32)
    TM = min(256, _round_up(M, 8))
    Mp = _round_up(M, TM)
    Np = _round_up(N, 128)
    TN = 256 if Np % 256 == 0 else 128
    # K: use a single full-extent block when small (no pad needed); otherwise
    # pad to a 128 multiple and tile.
    Kp = _round_up(K, 128) if (K > 2048 and K % 128 != 0) else K
    if Kp % 128 == 0:
        TK = 512 if Kp % 512 == 0 else (256 if Kp % 256 == 0 else 128)
    else:
        TK = Kp
    a_q = a.astype(BF16)
    b_q = b.astype(BF16)
    if (Mp, Kp) != (M, K):
        a_q = jnp.pad(a_q, ((0, Mp - M), (0, Kp - K)))
    if (Kp, Np) != (K, N):
        b_q = jnp.pad(b_q, ((0, Kp - K), (0, Np - N)))
    bias_p = jnp.pad(bias.astype(F32), ((0, Np - N),)).reshape(1, Np)
    out = pl.pallas_call(
        _MM_KERNELS[act],
        out_shape=jax.ShapeDtypeStruct((Mp, Np), F32),
        grid=(Mp // TM, Np // TN, Kp // TK),
        in_specs=[
            pl.BlockSpec((TM, TK), lambda i, j, k: (i, k)),
            pl.BlockSpec((TK, TN), lambda i, j, k: (k, j)),
            pl.BlockSpec((1, TN), lambda i, j, k: (0, j)),
        ],
        out_specs=pl.BlockSpec((TM, TN), lambda i, j, k: (i, j)),
        scratch_shapes=[pltpu.VMEM((TM, TN), F32)],
        compiler_params=pltpu.CompilerParams(
            dimension_semantics=("parallel", "parallel", "arbitrary"),
            vmem_limit_bytes=32 * 1024 * 1024),
    )(a_q, b_q, bias_p)
    if (Mp, Np) != (M, N):
        out = out[:M, :N]
    return out


def _ln_matmul_kernel(x_ref, g_ref, b_ref, w_ref, o_ref):
    # Fused LayerNorm (over the full, unpadded feature dim) + matmul.
    x = x_ref[...]
    mean = jnp.mean(x, axis=-1, keepdims=True)
    var = jnp.mean((x - mean) ** 2, axis=-1, keepdims=True)
    xn = (x - mean) * lax.rsqrt(var + 1e-5) * g_ref[...] + b_ref[...]
    o_ref[...] = jnp.dot(xn.astype(BF16), w_ref[...],
                         preferred_element_type=jnp.float32)


def pallas_ln_matmul(x, gamma, beta, w):
    """LayerNorm(x) @ w  with the normalization fused into the matmul kernel."""
    M, C = x.shape
    C2, N = w.shape
    assert C == C2
    TM = min(256, _round_up(M, 8))
    Mp = _round_up(M, TM)
    x_p = x.astype(F32)
    if Mp != M:
        x_p = jnp.pad(x_p, ((0, Mp - M), (0, 0)))
    out = pl.pallas_call(
        _ln_matmul_kernel,
        out_shape=jax.ShapeDtypeStruct((Mp, N), F32),
        grid=(Mp // TM,),
        in_specs=[
            pl.BlockSpec((TM, C), lambda i: (i, 0)),
            pl.BlockSpec((1, C), lambda i: (0, 0)),
            pl.BlockSpec((1, C), lambda i: (0, 0)),
            pl.BlockSpec((C, N), lambda i: (0, 0)),
        ],
        out_specs=pl.BlockSpec((TM, N), lambda i: (i, 0)),
        compiler_params=pltpu.CompilerParams(dimension_semantics=("parallel",)),
    )(x_p, gamma.reshape(1, C).astype(F32), beta.reshape(1, C).astype(F32),
      w.astype(BF16))
    return out[:M] if Mp != M else out


def _dwconv_silu_kernel(x_ref, w_ref, b_ref, o_ref):
    L, C = o_ref.shape
    K = w_ref.shape[0]
    x = x_ref[...]            # (L + K - 1, C) causally front-padded
    acc = jnp.zeros((L, C), F32) + b_ref[...]
    for k in range(K):
        acc = acc + x[k:k + L, :] * w_ref[pl.ds(k, 1), :]
    o_ref[...] = acc * jax.nn.sigmoid(acc)   # SiLU
    # TODO(synk): chunk the L axis with a (K-1)-row halo scratch for the real
    # (40,192,192) problem size; full-L blocks are fine at this synthetic size.


def pallas_dwconv_silu(x_padded, w, bias, L):
    B, Lp, C = x_padded.shape
    K = w.shape[0]
    return pl.pallas_call(
        _dwconv_silu_kernel,
        out_shape=jax.ShapeDtypeStruct((B, L, C), F32),
        grid=(B,),
        in_specs=[
            pl.BlockSpec((None, Lp, C), lambda b: (b, 0, 0)),
            pl.BlockSpec((K, C), lambda b: (0, 0)),
            pl.BlockSpec((1, C), lambda b: (0, 0)),
        ],
        out_specs=pl.BlockSpec((None, L, C), lambda b: (b, 0, 0)),
        compiler_params=pltpu.CompilerParams(dimension_semantics=("parallel",)),
    )(x_padded.astype(F32), w.astype(F32), bias.reshape(1, C).astype(F32))


def _scan_chunk(L):
    for c in (256, 128):
        if L % c == 0:
            return c
    return L


def _selective_scan_kernel(delta_ref, xc_ref, bT_ref, cT_ref, z_ref, aT_ref,
                           dvec_ref, o_ref, h_ref):
    # delta/xc/z/o : (T, d_inner); bT/cT : (d_state, T)
    # aT : (d_state, d_inner); dvec : (1, d_inner); h scratch: (d_state, d_inner)
    @pl.when(pl.program_id(1) == 0)
    def _():
        h_ref[...] = jnp.zeros_like(h_ref)

    T = o_ref.shape[0]
    aT = aT_ref[...]
    dvec = dvec_ref[...]
    bT = bT_ref[...]
    cT = cT_ref[...]
    lane_ids = lax.broadcasted_iota(jnp.int32, (1, T), 1)

    def body(t, h):
        onehot = (lane_ids == t).astype(F32)                        # (1, T)
        bcol = jnp.sum(bT * onehot, axis=1, keepdims=True)          # (d_state, 1)
        ccol = jnp.sum(cT * onehot, axis=1, keepdims=True)          # (d_state, 1)
        dlt = delta_ref[pl.ds(t, 1), :]                             # (1, d_inner)
        xct = xc_ref[pl.ds(t, 1), :]                                # (1, d_inner)
        h = jnp.exp(dlt * aT) * h + bcol * (dlt * xct)              # (d_state, d_inner)
        y = jnp.sum(h * ccol, axis=0, keepdims=True)                # (1, d_inner)
        zt = z_ref[pl.ds(t, 1), :]
        y = (y + xct * dvec) * (zt * jax.nn.sigmoid(zt))            # D skip + SiLU gate
        o_ref[pl.ds(t, 1), :] = y
        return h

    h_ref[...] = lax.fori_loop(0, T, body, h_ref[...])


def pallas_selective_scan(delta, xc, BmT, CmT, z, A_T, Dvec):
    """Fused Mamba selective scan: builds exp(dA), dBu, C-dot, D-skip and the
    SiLU(z) gate inside the kernel; L is chunked, h carried in VMEM scratch."""
    B, L, d_inner = delta.shape
    d_state = A_T.shape[0]
    T = _scan_chunk(L)
    spec_i = pl.BlockSpec((None, T, d_inner), lambda b, l: (b, l, 0))
    spec_s = pl.BlockSpec((None, d_state, T), lambda b, l: (b, 0, l))
    return pl.pallas_call(
        _selective_scan_kernel,
        out_shape=jax.ShapeDtypeStruct((B, L, d_inner), F32),
        grid=(B, L // T),
        in_specs=[spec_i, spec_i, spec_s, spec_s, spec_i,
                  pl.BlockSpec((d_state, d_inner), lambda b, l: (0, 0)),
                  pl.BlockSpec((1, d_inner), lambda b, l: (0, 0))],
        out_specs=spec_i,
        scratch_shapes=[pltpu.VMEM((d_state, d_inner), F32)],
        compiler_params=pltpu.CompilerParams(
            dimension_semantics=("parallel", "arbitrary"),
            vmem_limit_bytes=32 * 1024 * 1024),
    )(delta.astype(F32), xc.astype(F32), BmT.astype(F32), CmT.astype(F32),
      z.astype(F32), A_T.astype(F32), Dvec.reshape(1, d_inner).astype(F32))


# ----------------------------------------------------------------------------
# Conv glue (im2col -> tiled Pallas matmul)
# ----------------------------------------------------------------------------
def conv3d(x, w, stride):
    """x: (B, D, H, W, Cin) NDHWC, w: (kd, kh, kw, Cin, Cout), 'same' padding."""
    kd, kh, kw, Cin, Cout = w.shape
    sd, sh, sw = stride
    pd, ph, pw = kd // 2, kh // 2, kw // 2
    B, D, H, W, _ = x.shape
    Do = _conv_out(D, kd, sd)
    Ho = _conv_out(H, kh, sh)
    Wo = _conv_out(W, kw, sw)
    # patches built in bf16 (matmul operand dtype) to halve the im2col HBM bytes
    xp = jnp.pad(x.astype(BF16), ((0, 0), (pd, pd), (ph, ph), (pw, pw), (0, 0)))
    cols = []
    for i in range(kd):
        for j in range(kh):
            for k in range(kw):
                cols.append(xp[:, i:i + (Do - 1) * sd + 1:sd,
                               j:j + (Ho - 1) * sh + 1:sh,
                               k:k + (Wo - 1) * sw + 1:sw, :])
    patches = jnp.concatenate(cols, axis=-1)      # (B, Do, Ho, Wo, kd*kh*kw*Cin)
    # TODO(synk): replace the XLA-side im2col with an in-kernel halo conv (27
    # shifted MXU accumulations) to cut the 27x patch HBM traffic at real sizes.
    out = pallas_matmul(patches.reshape(-1, kd * kh * kw * Cin),
                        w.reshape(kd * kh * kw * Cin, Cout))
    return out.reshape(B, Do, Ho, Wo, Cout)


def conv_transpose3d(x, w, stride):
    """ConvTranspose with kernel == stride (no overlap). w: (Cin, Cout, sd, sh, sw)."""
    B, D, H, W, Cin = x.shape
    _, Cout, sd, sh, sw = w.shape
    y = pallas_matmul(x.reshape(-1, Cin), w.reshape(Cin, Cout * sd * sh * sw))
    y = y.reshape(B, D, H, W, Cout, sd, sh, sw)
    y = jnp.transpose(y, (0, 1, 5, 2, 6, 3, 7, 4))
    return y.reshape(B, D * sd, H * sh, W * sw, Cout)


# ----------------------------------------------------------------------------
# Parameter init (deterministic, synthetic)
# ----------------------------------------------------------------------------
class _Rng:
    def __init__(self, key):
        self.key = key

    def next(self):
        self.key, sub = jax.random.split(self.key)
        return sub


def _winit(rng, shape, fan_in):
    return jax.random.normal(rng.next(), shape, F32) * (1.0 / np.sqrt(max(fan_in, 1)))


def _init_basic_block(rng, cin, cout, k, stride):
    # BasicBlockD: conv(k, stride) -> conv(k, 1) -> (+ 1x1 projection skip if needed)
    p = {"conv1": _winit(rng, (k, k, k, cin, cout), cin * k ** 3),
         "conv2": _winit(rng, (k, k, k, cout, cout), cout * k ** 3)}
    if cin != cout or any(s != 1 for s in stride):
        p["skip"] = _winit(rng, (1, 1, 1, cin, cout), cin)
    return p


def _init_mamba(rng, C, d_state=16, d_conv=4, expand=2):
    d_inner = expand * C
    dt_rank = max(1, math.ceil(C / 16))
    A = jnp.tile(jnp.arange(1, d_state + 1, dtype=F32)[None, :], (d_inner, 1))
    return {
        "dims": (C, d_inner, d_state, dt_rank, d_conv),
        "ln_g": jnp.ones((C,), F32),
        "ln_b": jnp.zeros((C,), F32),
        "in_proj": _winit(rng, (C, 2 * d_inner), C),           # no bias (Mamba default)
        "conv_w": _winit(rng, (d_conv, d_inner), d_conv),       # depthwise causal conv
        "conv_b": _winit(rng, (d_inner,), d_conv),
        "x_proj": _winit(rng, (d_inner, dt_rank + 2 * d_state), d_inner),
        "dt_w": _winit(rng, (dt_rank, d_inner), dt_rank),
        "dt_b": jnp.full((d_inner,), 0.1, F32),
        "A_log": jnp.log(A),                                    # (d_inner, d_state)
        "D": jnp.ones((d_inner,), F32),
        "out_proj": _winit(rng, (d_inner, C), d_inner),
    }


def init_umamba_enc(key):
    cfg = dict(
        in_ch=2,
        n_stages=3,
        feats=(8, 16, 16),                       # scaled stand-in for [32,64,128,...]
        strides=((1, 1, 1), (1, 2, 2), (1, 2, 2)),
        spatial=(4, 16, 16),                     # (D, H, W) of the input volume
        lzz_strides=(((2, 2, 2), (2, 1, 1), (2, 1, 1)),
                     ((2, 2, 2), (2, 2, 2), (2, 1, 1), (2, 1, 1))),
    )
    rng = _Rng(key)
    feats, strides = cfg["feats"], cfg["strides"]
    n_stages = cfg["n_stages"]

    params = {"stem": _winit(rng, (3, 3, 3, cfg["in_ch"], feats[0]), cfg["in_ch"] * 27)}

    # encoder stage resolutions
    res = []
    cur = cfg["spatial"]
    for st in strides:
        cur = tuple(_conv_out(n, 3, s) for n, s in zip(cur, st))
        res.append(cur)

    enc_stages, mambas = [], []
    cin = feats[0]
    for s in range(n_stages):
        enc_stages.append(_init_basic_block(rng, cin, feats[s], 3, strides[s]))
        mambas.append(_init_mamba(rng, feats[s]))
        cin = feats[s]
    params["enc_stages"] = enc_stages
    params["mamba"] = mambas

    dec = []
    for s0 in range(n_stages - 1):
        below = feats[n_stages - 1 - s0]
        skipc = feats[n_stages - 2 - s0]
        tst = strides[n_stages - 1 - s0]
        out_res = res[n_stages - 2 - s0]
        num = out_res[0]                                       # depth acts as lzz channels
        dp = {
            "transp_stride": tst,
            "transp_w": _winit(rng, (below, skipc, tst[0], tst[1], tst[2]), below),
            "block": _init_basic_block(rng, 2 * skipc, skipc, 3, (1, 1, 1)),
            "lzz_strides": cfg["lzz_strides"][s0],
        }
        blocks = []
        spatial = [skipc, out_res[1], out_res[2]]
        for st in cfg["lzz_strides"][s0]:
            blocks.append(_init_basic_block(rng, num, num, 3, st))
            spatial = [_conv_out(n, 3, s) for n, s in zip(spatial, st)]
        dp["lzz_blocks"] = blocks
        flat = int(np.prod(spatial))
        f1 = max(4, flat // 2)
        f2 = max(2, f1 // 2)
        fc = []
        for fi, fo in ((flat, f1), (f1, f2), (f2, 1)):
            fc.append((_winit(rng, (fi, fo), fi), jnp.zeros((fo,), F32)))
        dp["fc"] = fc
        dec.append(dp)
    params["dec_stages"] = dec
    return params, cfg


# ----------------------------------------------------------------------------
# Forward pass
# ----------------------------------------------------------------------------
def basic_block_fwd(x, p, stride):
    y = conv3d(x, p["conv1"], stride)
    y = conv3d(y, p["conv2"], (1, 1, 1))
    res = conv3d(x, p["skip"], stride) if "skip" in p else x
    return y + res


def dec_merge_block_fwd(xa, xb, p):
    """BasicBlockD over the channel-concat [xa, xb]; the concat is folded into
    split conv weights (two summed matmul contributions, no 2x-channel tensor)."""
    ca = xa.shape[-1]
    w1, ws = p["conv1"], p["skip"]
    y = (conv3d(xa, w1[:, :, :, :ca, :], (1, 1, 1)) +
         conv3d(xb, w1[:, :, :, ca:, :], (1, 1, 1)))
    y = conv3d(y, p["conv2"], (1, 1, 1))
    res = (conv3d(xa, ws[:, :, :, :ca, :], (1, 1, 1)) +
           conv3d(xb, ws[:, :, :, ca:, :], (1, 1, 1)))
    return y + res


def mamba_fwd(x, p):
    """x: (B, L, C) — LayerNorm + Mamba(d_model=C, d_state=16, d_conv=4, expand=2)."""
    C, d_inner, d_state, dt_rank, d_conv = p["dims"]
    B, L, _ = x.shape
    # fused LayerNorm + in_proj (single Pallas kernel)
    xz = pallas_ln_matmul(x.reshape(-1, C), p["ln_g"], p["ln_b"],
                          p["in_proj"]).reshape(B, L, 2 * d_inner)
    xin, z = xz[..., :d_inner], xz[..., d_inner:]
    xpad = jnp.pad(xin, ((0, 0), (d_conv - 1, 0), (0, 0)))      # causal padding
    xc = pallas_dwconv_silu(xpad, p["conv_w"], p["conv_b"], L)   # conv1d + SiLU
    xc2 = xc.reshape(-1, d_inner)
    # compose x_proj(dt part) with dt_proj (exact algebra, params only -> tiny)
    w_dt = jnp.dot(p["x_proj"][:, :dt_rank], p["dt_w"])          # (d_inner, d_inner)
    delta = pallas_matmul(xc2, w_dt, bias=p["dt_b"],
                          act="softplus").reshape(B, L, d_inner)
    bc = pallas_matmul(xc2, p["x_proj"][:, dt_rank:])            # (B*L, 2*d_state)
    BmT = jnp.transpose(bc[:, :d_state].reshape(B, L, d_state), (0, 2, 1))
    CmT = jnp.transpose(bc[:, d_state:].reshape(B, L, d_state), (0, 2, 1))
    A_T = (-jnp.exp(p["A_log"])).T                               # (d_state, d_inner)
    y = pallas_selective_scan(delta, xc, BmT, CmT, z, A_T, p["D"])
    return pallas_matmul(y.reshape(-1, d_inner), p["out_proj"]).reshape(B, L, C)


def mamba_layer_fwd(x, p):
    B, D, H, W, C = x.shape
    L = D * H * W
    return mamba_fwd(x.reshape(B, L, C), p).reshape(B, D, H, W, C)


def encoder_fwd(params, cfg, x):
    x = conv3d(x, params["stem"], (1, 1, 1))
    skips = []
    for s in range(cfg["n_stages"]):
        x = basic_block_fwd(x, params["enc_stages"][s], cfg["strides"][s])
        x = mamba_layer_fwd(x, params["mamba"][s])
        skips.append(x)
    return skips


def decoder_fwd(params, skips):
    seg_outputs = []
    lres = skips[-1]
    for s, dp in enumerate(params["dec_stages"]):
        xup = conv_transpose3d(lres, dp["transp_w"], dp["transp_stride"])
        x = dec_merge_block_fwd(xup, skips[-(s + 2)], dp["block"])
        lres = x
        # lzz path: torch does x.transpose(1, 2) -> conv channels = depth ("num"),
        # spatial = (feature-channels, w, h). NDHWC equivalent below.
        xl = jnp.transpose(x, (0, 4, 2, 3, 1))        # (B, ch, w, h, num)
        for lp, st in zip(dp["lzz_blocks"], dp["lzz_strides"]):
            xl = basic_block_fwd(xl, lp, st)
        B_, cp, wp, hp, num = xl.shape
        xfc = jnp.transpose(xl, (0, 4, 1, 2, 3)).reshape(B_ * num, cp * wp * hp)
        for Wf, bf in dp["fc"]:
            xfc = pallas_matmul(xfc, Wf, bias=bf, act="tanh")   # Linear + Tanh
        seg_outputs.append(xfc.reshape(B_, num, -1))
    return seg_outputs


def umamba_enc_forward(params, cfg, x_ncdhw):
    x = jnp.transpose(x_ncdhw.astype(F32), (0, 2, 3, 4, 1))     # NCDHW -> NDHWC
    skips = encoder_fwd(params, cfg, x)
    return decoder_fwd(params, skips)


# ----------------------------------------------------------------------------
if __name__ == "__main__":
    key = jax.random.PRNGKey(0)
    params, cfg = init_umamba_enc(key)
    D, H, W = cfg["spatial"]
    x = jax.random.normal(jax.random.fold_in(key, 123),
                          (2, cfg["in_ch"], D, H, W), F32)       # NCDHW like PyTorch
    outs = umamba_enc_forward(params, cfg, x)
    for o in outs:
        jax.block_until_ready(o)
    print("KERNEL_OK")
</pallas_src>

<mosaic_0001>
module attributes {stable_mosaic.version = 11 : i64} {
  func.func @_matmul_kernel(%arg0: i32, %arg1: i32, %arg2: i32, %arg3: memref<256x54xbf16, #tpu.memory_space<vmem>>, %arg4: memref<54x128xbf16, #tpu.memory_space<vmem>>, %arg5: memref<1x128xf32, #tpu.memory_space<vmem>>, %arg6: memref<256x128xf32, #tpu.memory_space<vmem>>, %arg7: memref<256x128xf32, #tpu.memory_space<vmem>>) attributes {dimension_semantics = [#tpu.dimension_semantics<parallel>, #tpu.dimension_semantics<parallel>, #tpu.dimension_semantics<arbitrary>], iteration_bounds = array<i64: 8, 1, 1>, scalar_prefetch = 0 : i64, scratch_operands = 1 : i64, tpu.core_type = #tpu.core_type<tc>, window_params = [{transform_indices = @transform_0, window_bounds = array<i64: 256, 54>}, {transform_indices = @transform_1, window_bounds = array<i64: 54, 128>}, {transform_indices = @transform_2, window_bounds = array<i64: 1, 128>}, {transform_indices = @transform_3, window_bounds = array<i64: 256, 128>}]} {
    %c0_i32 = arith.constant 0 : i32
    %0 = arith.cmpi eq, %arg2, %c0_i32 : i32
    %1 = arith.extui %0 : i1 to i32
    %c0_i32_0 = arith.constant 0 : i32
    %2 = arith.cmpi ne, %1, %c0_i32_0 : i32
    scf.if %2 {
      %cst_10 = arith.constant 0.000000e+00 : f32
      %12 = vector.broadcast %cst_10 : f32 to vector<256x128xf32>
      %c0_11 = arith.constant 0 : index
      %c0_12 = arith.constant 0 : index
      %13 = vector.load %arg7[%c0_11, %c0_12] : memref<256x128xf32, #tpu.memory_space<vmem>>, vector<256x128xf32>
      tpu.vector_store %arg7[%c0_11, %c0_12], %12 {strides = array<i32>} : memref<256x128xf32, #tpu.memory_space<vmem>>, vector<256x128xf32>,
    } else {
    }
    %c0 = arith.constant 0 : index
    %c0_1 = arith.constant 0 : index
    %3 = vector.load %arg7[%c0, %c0_1] : memref<256x128xf32, #tpu.memory_space<vmem>>, vector<256x128xf32>
    %c0_2 = arith.constant 0 : index
    %c0_3 = arith.constant 0 : index
    %4 = vector.load %arg3[%c0_2, %c0_3] : memref<256x54xbf16, #tpu.memory_space<vmem>>, vector<256x54xbf16>
    %c0_4 = arith.constant 0 : index
    %c0_5 = arith.constant 0 : index
    %5 = vector.load %arg4[%c0_4, %c0_5] : memref<54x128xbf16, #tpu.memory_space<vmem>>, vector<54x128xbf16>
    %cst = arith.constant dense<0.000000e+00> : vector<256x128xf32>
    %6 = tpu.matmul %4, %5, %cst {dimension_numbers = #tpu.dot_dimension_numbers<[1], [0], [0], [1], [0, 0, 1, 1], [], []>} : vector<256x54xbf16>, vector<54x128xbf16>, vector<256x128xf32> -> vector<256x128xf32>
    %7 = arith.addf %3, %6 : vector<256x128xf32>
    %c0_6 = arith.constant 0 : index
    %c0_7 = arith.constant 0 : index
    %8 = vector.load %arg7[%c0_6, %c0_7] : memref<256x128xf32, #tpu.memory_space<vmem>>, vector<256x128xf32>
    tpu.vector_store %arg7[%c0_6, %c0_7], %7 {strides = array<i32>} : memref<256x128xf32, #tpu.memory_space<vmem>>, vector<256x128xf32>,
    %c0_i32_8 = arith.constant 0 : i32
    %9 = arith.cmpi eq, %arg2, %c0_i32_8 : i32
    %10 = arith.extui %9 : i1 to i32
    %c0_i32_9 = arith.constant 0 : i32
    %11 = arith.cmpi ne, %10, %c0_i32_9 : i32
    scf.if %11 {
      %c0_10 = arith.constant 0 : index
      %c0_11 = arith.constant 0 : index
      %12 = vector.load %arg7[%c0_10, %c0_11] : memref<256x128xf32, #tpu.memory_space<vmem>>, vector<256x128xf32>
      %c0_12 = arith.constant 0 : index
      %c0_13 = arith.constant 0 : index
      %13 = vector.load %arg5[%c0_12, %c0_13] : memref<1x128xf32, #tpu.memory_space<vmem>>, vector<1x128xf32>
      %14 = vector.broadcast %13 : vector<1x128xf32> to vector<256x128xf32>
      %15 = arith.addf %12, %14 : vector<256x128xf32>
      %c0_14 = arith.constant 0 : index
      %c0_15 = arith.constant 0 : index
      %16 = vector.load %arg6[%c0_14, %c0_15] : memref<256x128xf32, #tpu.memory_space<vmem>>, vector<256x128xf32>
      tpu.vector_store %arg6[%c0_14, %c0_15], %15 {strides = array<i32>} : memref<256x128xf32, #tpu.memory_space<vmem>>, vector<256x128xf32>,
    } else {
    }
    return
  }
  func.func @transform_0(%arg0: i32, %arg1: i32, %arg2: i32) -> (i32, i32) {
    %c0_i32 = arith.constant 0 : i32
    return %arg0, %arg2 : i32, i32
  }
  func.func @transform_1(%arg0: i32, %arg1: i32, %arg2: i32) -> (i32, i32) {
    %c0_i32 = arith.constant 0 : i32
    return %arg2, %arg1 : i32, i32
  }
  func.func @transform_2(%arg0: i32, %arg1: i32, %arg2: i32) -> (i32, i32) {
    %c0_i32 = arith.constant 0 : i32
    %c0_i32_0 = arith.constant 0 : i32
    return %c0_i32, %arg1 : i32, i32
  }
  func.func @transform_3(%arg0: i32, %arg1: i32, %arg2: i32) -> (i32, i32) {
    %c0_i32 = arith.constant 0 : i32
    return %arg0, %arg1 : i32, i32
  }
}

</mosaic_0001>

<bundles_post_ra>
// kernel: tpu_custom_call.1
= control target key start
LH: loop header
LB: loop body
LE: loop exit
PB: predicated region body
PF: predicated region fallthrough
CT: control target
= control target key end

     0   :  { %8 = vsyncpa [#allocation4], 0  ;;  %s1506_s0 = inlined_call_operand.vmem [shape: bf16[2048,54], index: 0, kind: input, shape index: {}]   ;;  %s1507_s1 = inlined_call_operand.vmem [shape: bf16[54,128], index: 1, kind: input, shape index: {}]   ;;  %s1508_s2 = inlined_call_operand.vmem [shape: f32[1,128], index: 2, kind: input, shape index: {}]   ;;  %s1509_s3 = inlined_call_operand.hbm [shape: f32[2048,128], index: 3, kind: output, shape index: {}]  }
   0x1   :  { %10 = vsyncpa [#allocation4 + $0x1], 0  ;;  %s1270_s12 = smov 0   ;;  %s1272_s13 = smov 0  }
   0x2   :  { %s1274_s14 = smov 0   ;;  %s1276_s15 = smov 0  }
   0x3   :  { %s1278_s16 = smov 0   ;;  %s1280_s17 = smov 0  }
   0x4 LB: > { %s967_s18 = sadd.s32 4294967295, %s1245_s17   ;;  %s968_s19 = sadd.s32 4294967294, %s1245_s17   ;;  %s1245_s17 = sphi %s1280_s17, %s16_s17   ;;  %s1241_s16 = sphi %s1278_s16, %s1516_s16   ;;  %s1237_s15 = sphi %s1276_s15, %s1515_s15   ;;  %s1233_s14 = sphi %s1274_s14, %s1514_s14   ;;  %s1229_s13 = sphi %s1272_s13, %s1513_s13   ;;  %s1225_s12 = sphi %s1270_s12, %s1512_s12  }
   0x5   : > { %s35_s20 = sadd.s32 1, %s1241_s16  ;;  %s126_s21 = sadd.s32 1, %s1233_s14 }
   0x6   : > { %p37_p0 = scmp.ge.s32.totalorder %s35_s20, 8  ;;  %p136_p1 = scmp.ne.s32.totalorder %s1233_s14, %s1229_s13 }
   0x7   : > { %p137_p2 = scmp.eq.s32.totalorder %s967_s18, 7  ;;  %p142_p3 = scmp.ne.s32.totalorder %s1229_s13, %s1225_s12 }
   0x8   : > { %s1518_s20 = smov (%p37_p0, %s35_s20), 0  ;;  %p143_p5 = scmp.eq.s32.totalorder %s968_s19, 7 }
   0x9   : > { %p1310_p4 = por %p137_p2, %p136_p1  ;;  %s121_s23 = ssub.s32 %s1241_s16, %s1518_s20 }
   0xa   : > { %p973_p6 = scmp.ge.s32.totalorder %s1245_s17, 1  ;;  %p124_p7 = scmp.eq.s32.totalorder %s121_s23, 0 }
   0xb   : > { %p1317_p8 = por %p143_p5, %p142_p3  ;;  %p191_p9 = scmp.lt.s32.totalorder %s1245_s17, 9 }
   0xc   : > { %s1323_s25 = scalar_select %p124_p7, %s1233_s14, %s126_s21  }
   0xd   : > { %p192_p10 = pnand %p973_p6, %p191_p9 }
   0xe   : > { %v1147_v0 = vld [vmem:[%s1507_s1] sm:$0xff] (!%p192_p10)   ;;  %v1148_v1 = vld [vmem:[%s1507_s1 + $0x8] sm:$0xff] (!%p192_p10)   ;;  %s975_s30 = sshll.u32 (!%p192_p10), %s1237_s15, 5  ;;  %v1149_v2 = vld [vmem:[%s1507_s1 + $0x10] sm:$0xff] (!%p192_p10)   ;;  %vm460_vm0 = vcmask (!%p192_p10), 441344   ;;  %vm509_vm1 = vcmask (!%p192_p10), 1042432  }
   0xf   : > { %195 = sbr.rel (%p192_p10) target bundleno = 287 (0x11f), region = 32  ;;  %1040 = vmatprep.subr.bf16.mxu0 (!%p192_p10), %v1147_v0  ;;  %1080 = vmatprep.subr.bf16.mxu1 (!%p192_p10), %v1147_v0  ;;  %p230_p11 = scmp.lt.s32.totalorder (!%p192_p10), %s975_s30, 255  ;;  %v1150_v3 = vld [vmem:[%s1507_s1 + $0x18] ss:$0 sps:$4 sm:$0x77] (!%p192_p10)  }
  0x10   : > { %1041 = vmatpush3.bf16.msra.mxu0 (!%p192_p10), %v1147_v0  ;;  %1084 = vmatpush3.bf16.msra.mxu1 (!%p192_p10), %v1147_v0  ;;  %v511_v6 = vsel (!%p192_p10), %vm509_vm1, %v1150_v3, 0  ;;  %s226_s18 = sand.u32 (!%p192_p10), 1, %s1229_s13   ;;  %v1381_v21 = vld [vmem:[%s1508_s2] ss:$0 sm:$0xff] (!%p192_p10)  ;;  %s1019_s27 = sshll.u32 (!%p192_p10), %s1237_s15, 12 }
  0x11   : > { %1042 = vmatprep.subr.bf16.mxu0 (!%p192_p10), %v1148_v1  ;;  %1081 = vmatprep.subr.bf16.mxu1 (!%p192_p10), %v1148_v1  ;;  %s974_s19 = sshll.u32 (!%p192_p10), %s226_s18, 8  ;;  %s1460_s4 = scalar_lea.sflag (!%p192_p10), [#allocation4], %s226_s18 }
  0x12   : > { %s1387_s26 = scalar_lea.vmem (!%p192_p10), [#allocation3], %s974_s19 }
  0x13   : > { %s859_s28 = sshll.u32 (!%p192_p10), %s1387_s26, 4  ;;  %s1448_s28 = int_to_ptr.vmem [resolvable:$true] %s859_s28 }
  0x14   : > { %1043 = vmatpush3.bf16.msra.mxu0 (!%p192_p10), %v1148_v1  ;;  %1085 = vmatpush3.bf16.msra.mxu1 (!%p192_p10), %v1148_v1  ;;  %s1167_s5 = scalar_lea.vmem (!%p192_p10), %s1448_s28, 4096 }
  0x15   : > { %1044 = vmatprep.subr.bf16.mxu0 (!%p192_p10), %v1149_v2  ;;  %1082 = vmatprep.subr.bf16.mxu1 (!%p192_p10), %v1149_v2  ;;  %p1168_p12 = scmp.ne.s32.totalorder (!%p192_p10), %s1448_s28, %s1167_s5 }
  0x16   : > { %s1520_s30 = smov (!%p230_p11, %s975_s30), 255 }
  0x17   : > { %s976_s6 = sshll.u32 %s1520_s30, 2  ;;  %s1446_s30 = scalar_lea.hbm %s1509_s3, %s1019_s27 }
  0x18   : > { %s1341_s11 = scalar_lea.vmem %s1506_s0, %s976_s6  ;;  %1045 = vmatpush3.bf16.msra.mxu0 %v1149_v2  ;;  %1086 = vmatpush3.bf16.msra.mxu1 %v1149_v2  ;;  %p1169_p13 = pnand %p1168_p12, %p1310_p4 }
  0x19   : > { %v1151_v4 = vld [vmem:[%s1341_s11] sm:$0xff]   ;;  %1088 = vmatprep.subr.msk.bf16.mxu0 %vm509_vm1, %v1150_v3  ;;  %1089 = vmatprep.subr.msk.bf16.mxu1 %vm509_vm1, %v1150_v3  ;;  %v1153_v7 = vld [vmem:[%s1341_s11 + $0x8] sm:$0xff]   ;;  %v1155_v9 = vld [vmem:[%s1341_s11 + $0x10] sm:$0xff]   ;;  %s1247_s6 = smov [#allocation3]  }
  0x1a   : > { %v1152_v5 = vld [vmem:[%s1341_s11 + $0x40] sm:$0xff]   ;;  %1048 = vmatprep.mubr.msk.bf16.mxu0 %vm460_vm0, %v1151_v4  ;;  %v1154_v8 = vld [vmem:[%s1341_s11 + $0x48] sm:$0xff]   ;;  %v1156_v10 = vld [vmem:[%s1341_s11 + $0x50] sm:$0xff]   ;;  %p1170_p0 = pneg %p1169_p13  ;;  %s1171_s7 = sshll.u32 %s1247_s6, 4  ;;  %s1172_s7 = int_to_ptr.vmem [resolvable:$false] %s1171_s7 }
  0x1b   : > { %1064 = vmatprep.mubr.msk.bf16.mxu1 %vm460_vm0, %v1152_v5  ;;  %v1157_v11 = vld [vmem:[%s1341_s11 + $0x18] sm:$0xff]   ;;  %v1159_v13 = vld [vmem:[%s1341_s11 + $0x20] sm:$0xff]   ;;  %v1161_v15 = vld [vmem:[%s1341_s11 + $0x28] sm:$0xff]   ;;  %s1173_s8 = scalar_lea.vmem %s1172_s7, 8192  ;;  %p1174_p1 = scmp.lt.s32.totalorder %s1448_s28, %s1172_s7 }
  0x1c   : > { %1047 = vmatpush3.bf16.msra.mxu0 %v511_v6  ;;  %1087 = vmatpush3.bf16.msra.mxu1 %v511_v6  ;;  %v1158_v12 = vld [vmem:[%s1341_s11 + $0x58] sm:$0xff]   ;;  %v1160_v14 = vld [vmem:[%s1341_s11 + $0x60] sm:$0xff]   ;;  %v1162_v16 = vld [vmem:[%s1341_s11 + $0x68] sm:$0xff]   ;;  %p1175_p2 = scmp.lt.s32.totalorder %s1173_s8, %s1167_s5 }
  0x1d   : > { %v1163_v17 = vld [vmem:[%s1341_s11 + $0x30] sm:$0xff]   ;;  %v1165_v19 = vld [vmem:[%s1341_s11 + $0x38] sm:$0xff]  }
  0x1e   : > { %v1164_v18 = vld [vmem:[%s1341_s11 + $0x70] sm:$0xff]   ;;  %v1166_v20 = vld [vmem:[%s1341_s11 + $0x78] sm:$0xff]   ;;  %p1176_p3 = por %p1175_p2, %p1174_p1 }
  0x1f   : > { %1049 = vmatmul.mubr.msk.bf16.vlgmr.msra.gmra.mrb[0].mxu0 %vm460_vm0, %v1153_v7  ;;  %1065 = vmatmul.mubr.msk.bf16.vlgmr.msra.gmra.mrb[0].mxu1 %vm460_vm0, %v1154_v8 }
  0x20   : > { %1052 = vmatprep.mubr.msk.bf16.mxu0 %vm460_vm0, %v1155_v9  ;;  %1068 = vmatprep.mubr.msk.bf16.mxu1 %vm460_vm0, %v1156_v10  ;;  %p1177_p5 = pnand %p1176_p3, %p1170_p0 }
  0x27   : > { %1053 = vmatmul.mubr.msk.bf16.gmra.mrb[4].mxu0 %vm460_vm0, %v1157_v11  ;;  %1069 = vmatmul.mubr.msk.bf16.gmra.mrb[4].mxu1 %vm460_vm0, %v1158_v12 }
  0x28   : > { %1056 = vmatprep.mubr.msk.bf16.mxu0 %vm460_vm0, %v1159_v13  ;;  %1072 = vmatprep.mubr.msk.bf16.mxu1 %vm460_vm0, %v1160_v14 }
  0x2f   : > { %1057 = vmatmul.mubr.msk.bf16.gmra.mrb[8].mxu0 %vm460_vm0, %v1161_v15  ;;  %1073 = vmatmul.mubr.msk.bf16.gmra.mrb[8].mxu1 %vm460_vm0, %v1162_v16 }
  0x30   : > { %1060 = vmatprep.mubr.msk.bf16.mxu0 %vm460_vm0, %v1163_v17  ;;  %1076 = vmatprep.mubr.msk.bf16.mxu1 %vm460_vm0, %v1164_v18 }
  0x37   : > { %1061 = vmatmul.mubr.msk.bf16.gmra.mrb[12].mxu0 %vm460_vm0, %v1165_v19  ;;  %1077 = vmatmul.mubr.msk.bf16.gmra.mrb[12].mxu1 %vm460_vm0, %v1166_v20 }
  0xf2   : > { %v1050_v22 = vpop.f32.mrb[0].mxu0  ;;  %v1066_v23 = vpop.f32.mrb[0].mxu1 }
  0xf3   : > { %v782_v24 = vadd.f32 %v1050_v22, %v1381_v21  ;;  %v798_v25 = vadd.f32 %v1066_v23, %v1381_v21  ;;  %v547_v26 = vpop.f32.mrb[1].mxu0  ;;  %v611_v27 = vpop.f32.mrb[1].mxu1 }
  0xf4   : > { %v780_v28 = vadd.f32 %v1381_v21, %v547_v26  ;;  %v796_v29 = vadd.f32 %v1381_v21, %v611_v27  ;;  %v1051_v30 = vpop.f32.mrb[2].mxu0  ;;  %v1067_v31 = vpop.f32.mrb[2].mxu1 }
  0xf5   : > { %814 = vst [vmem:[%s1387_s26 + $0x10] sm:$0xff] %v782_v24  ;;  %830 = vst [vmem:[%s1387_s26 + $0x90] sm:$0xff] %v798_v25  ;;  %v783_v32 = vadd.f32 %v1051_v30, %v1381_v21  ;;  %v799_v33 = vadd.f32 %v1067_v31, %v1381_v21  ;;  %v550_v34 = vpop.f32.mrb[3].mxu0  ;;  %v614_v35 = vpop.f32.mrb[3].mxu1 }
  0xf6   : > { %812 = vst [vmem:[%s1387_s26] sm:$0xff] %v780_v28  ;;  %828 = vst [vmem:[%s1387_s26 + $0x80] sm:$0xff] %v796_v29  ;;  %v781_v36 = vadd.f32 %v1381_v21, %v550_v34  ;;  %v797_v37 = vadd.f32 %v1381_v21, %v614_v35 }
  0xf7   : > { %815 = vst [vmem:[%s1387_s26 + $0x18] sm:$0xff] %v783_v32  ;;  %831 = vst [vmem:[%s1387_s26 + $0x98] sm:$0xff] %v799_v33 }
  0xf8   : > { %813 = vst [vmem:[%s1387_s26 + $0x8] sm:$0xff] %v781_v36  ;;  %829 = vst [vmem:[%s1387_s26 + $0x88] sm:$0xff] %v797_v37 }
  0xfa   : > { %v1054_v38 = vpop.f32.mrb[4].mxu0  ;;  %v1070_v39 = vpop.f32.mrb[4].mxu1 }
  0xfb   : > { %v786_v40 = vadd.f32 %v1054_v38, %v1381_v21  ;;  %v802_v41 = vadd.f32 %v1070_v39, %v1381_v21  ;;  %v563_v42 = vpop.f32.mrb[5].mxu0  ;;  %v627_v43 = vpop.f32.mrb[5].mxu1 }
  0xfc   : > { %v784_v44 = vadd.f32 %v1381_v21, %v563_v42  ;;  %v800_v45 = vadd.f32 %v1381_v21, %v627_v43  ;;  %v1055_v46 = vpop.f32.mrb[6].mxu0  ;;  %v1071_v47 = vpop.f32.mrb[6].mxu1 }
  0xfd   : > { %818 = vst [vmem:[%s1387_s26 + $0x30] sm:$0xff] %v786_v40  ;;  %834 = vst [vmem:[%s1387_s26 + $0xb0] sm:$0xff] %v802_v41  ;;  %v787_v48 = vadd.f32 %v1055_v46, %v1381_v21  ;;  %v803_v49 = vadd.f32 %v1071_v47, %v1381_v21  ;;  %v566_v50 = vpop.f32.mrb[7].mxu0  ;;  %v630_v51 = vpop.f32.mrb[7].mxu1 }
  0xfe   : > { %816 = vst [vmem:[%s1387_s26 + $0x20] sm:$0xff] %v784_v44  ;;  %832 = vst [vmem:[%s1387_s26 + $0xa0] sm:$0xff] %v800_v45  ;;  %v785_v52 = vadd.f32 %v1381_v21, %v566_v50  ;;  %v801_v53 = vadd.f32 %v1381_v21, %v630_v51 }
  0xff   : > { %819 = vst [vmem:[%s1387_s26 + $0x38] sm:$0xff] %v787_v48  ;;  %835 = vst [vmem:[%s1387_s26 + $0xb8] sm:$0xff] %v803_v49 }
 0x100   : > { %817 = vst [vmem:[%s1387_s26 + $0x28] sm:$0xff] %v785_v52  ;;  %833 = vst [vmem:[%s1387_s26 + $0xa8] sm:$0xff] %v801_v53 }
 0x102   : > { %v1058_v54 = vpop.f32.mrb[8].mxu0  ;;  %v1074_v55 = vpop.f32.mrb[8].mxu1 }
 0x103   : > { %v790_v56 = vadd.f32 %v1058_v54, %v1381_v21  ;;  %v806_v57 = vadd.f32 %v1074_v55, %v1381_v21  ;;  %v579_v58 = vpop.f32.mrb[9].mxu0  ;;  %v643_v59 = vpop.f32.mrb[9].mxu1 }
 0x104   : > { %v788_v60 = vadd.f32 %v1381_v21, %v579_v58  ;;  %v804_v61 = vadd.f32 %v1381_v21, %v643_v59  ;;  %v1059_v62 = vpop.f32.mrb[10].mxu0  ;;  %v1075_v63 = vpop.f32.mrb[10].mxu1 }
 0x105   : > { %822 = vst [vmem:[%s1387_s26 + $0x50] sm:$0xff] %v790_v56  ;;  %838 = vst [vmem:[%s1387_s26 + $0xd0] sm:$0xff] %v806_v57  ;;  %v791_v0 = vadd.f32 %v1059_v62, %v1381_v21  ;;  %v807_v1 = vadd.f32 %v1075_v63, %v1381_v21  ;;  %v582_v2 = vpop.f32.mrb[11].mxu0  ;;  %v646_v3 = vpop.f32.mrb[11].mxu1 }
 0x106   : > { %820 = vst [vmem:[%s1387_s26 + $0x40] sm:$0xff] %v788_v60  ;;  %836 = vst [vmem:[%s1387_s26 + $0xc0] sm:$0xff] %v804_v61  ;;  %v789_v4 = vadd.f32 %v1381_v21, %v582_v2  ;;  %v805_v5 = vadd.f32 %v1381_v21, %v646_v3 }
 0x107   : > { %823 = vst [vmem:[%s1387_s26 + $0x58] sm:$0xff] %v791_v0  ;;  %839 = vst [vmem:[%s1387_s26 + $0xd8] sm:$0xff] %v807_v1 }
 0x108   : > { %821 = vst [vmem:[%s1387_s26 + $0x48] sm:$0xff] %v789_v4  ;;  %837 = vst [vmem:[%s1387_s26 + $0xc8] sm:$0xff] %v805_v5 }
 0x10a   : > { %v1062_v6 = vpop.f32.mrb[12].mxu0  ;;  %v1078_v7 = vpop.f32.mrb[12].mxu1 }
 0x10b   : > { %v794_v8 = vadd.f32 %v1062_v6, %v1381_v21  ;;  %v810_v9 = vadd.f32 %v1078_v7, %v1381_v21  ;;  %v595_v10 = vpop.f32.mrb[13].mxu0  ;;  %v659_v11 = vpop.f32.mrb[13].mxu1 }
 0x10c   : > { %v792_v12 = vadd.f32 %v1381_v21, %v595_v10  ;;  %v808_v13 = vadd.f32 %v1381_v21, %v659_v11  ;;  %v1063_v14 = vpop.f32.mrb[14].mxu0  ;;  %v1079_v15 = vpop.f32.mrb[14].mxu1 }
 0x10d   : > { %826 = vst [vmem:[%s1387_s26 + $0x70] sm:$0xff] %v794_v8  ;;  %842 = vst [vmem:[%s1387_s26 + $0xf0] sm:$0xff] %v810_v9  ;;  %v795_v16 = vadd.f32 %v1063_v14, %v1381_v21  ;;  %v811_v17 = vadd.f32 %v1079_v15, %v1381_v21  ;;  %v598_v18 = vpop.f32.mrb[15].mxu0  ;;  %v662_v19 = vpop.f32.mrb[15].mxu1 }
 0x10e   : > { %824 = vst [vmem:[%s1387_s26 + $0x60] sm:$0xff] %v792_v12  ;;  %840 = vst [vmem:[%s1387_s26 + $0xe0] sm:$0xff] %v808_v13  ;;  %v793_v20 = vadd.f32 %v1381_v21, %v598_v18  ;;  %v809_v22 = vadd.f32 %v1381_v21, %v662_v19 }
 0x10f   : > { %827 = vst [vmem:[%s1387_s26 + $0x78] sm:$0xff] %v795_v16  ;;  %843 = vst [vmem:[%s1387_s26 + $0xf8] sm:$0xff] %v811_v17 }
 0x110   : > { %825 = vst [vmem:[%s1387_s26 + $0x68] sm:$0xff] %v793_v20  ;;  %841 = vst [vmem:[%s1387_s26 + $0xe8] sm:$0xff] %v809_v22 }
 0x111   : > { %1180 = shalt.err (!%p1177_p5)
}
 0x112   : > { %s1181_s9 = scalar_lea.hbm %s1446_s30, 4096  ;;  %s1185_s18 = scalar_lea.hbm %s1509_s3, 32768 }
 0x113   : > { %p1182_p6 = scmp.ne.s32.totalorder %s1446_s30, %s1181_s9  ;;  %p1186_p10 = scmp.lt.u32.totalorder %s1446_s30, %s1509_s3 }
 0x114   : > { %p1187_p11 = scmp.lt.u32.totalorder %s1185_s18, %s1181_s9  ;;  %p1189_p13 = scmp.lt.u32.totalorder %s1181_s9, %s1446_s30 }
 0x115   : > { %p1183_p7 = pnand %p1182_p6, %p1310_p4 }
 0x116   : > { %p1188_p12 = por %p1187_p11, %p1186_p10 }
 0x117   : > { %p1184_p9 = pneg %p1183_p7 }
 0x118   : > { %p1190_p0 = por %p1189_p13, %p1188_p12 }
 0x11a   : > { %p1191_p1 = pnand %p1190_p0, %p1184_p9 }
 0x11c   : > { %1194 = shalt.err (!%p1191_p1)
}
 0x11d   : > { %s1248_s23 = smov 128   ;;  %s1249_s26 = smov 8  }
 0x11e   : > { %1090 = dma.vmem_to_hbm [thread:$0]  (%p1310_p4), %s1448_s28, 4096, %s1446_s30, %s1460_s4, %s1248_s23, %s1248_s23, %s1249_s26  }
 0x11f PF: > { %p1096_p2 = scmp.ge.s32.totalorder %s1245_s17, 2  ;;  %s874_s27 = sand.u32 1, %s1225_s12  }
 0x120   : > { %s875_s15 = scalar_lea.sflag [#allocation4], %s874_s27 }
 0x121   : > { %p1093_p3 = pnand %p1096_p2, %p1317_p8 }
 0x123   : > { %1220 = dma.done.wait (!%p1093_p3), %s875_s15, 4096  }
 0x124   : > { %1222 = vsyncadd (!%p1093_p3), %s875_s15, 4294963200  ;;  %s16_s17 = sadd.s32 1, %s1245_s17   ;;  %s1512_s12 = smov %s1229_s13 }
 0x125   : > { %p13_p5 = scmp.ge.s32.totalorder %s16_s17, 10   ;;  %s1513_s13 = smov %s1233_s14 }
 0x126   : > { %s1514_s14 = smov %s1323_s25  ;;  %s1515_s15 = smov %s1241_s16 }
 0x127   : > { %s1516_s16 = smov %s1518_s20  ;;  %15 = sbr.rel (!%p13_p5) target bundleno = 4 (0x4), region = 81 }
 0x12e   :  { %880 = vsyncpa [#allocation4], 1 }
 0x12f   :  { %882 = vsyncpa [#allocation4 + $0x1], 1 }

</bundles_post_ra>
